<compile_context>
chip_gen: v7x
topology: tpu7x:2x2x1
jax: 0.10.0
libtpu: 0.0.40
codegen_flags: <defaults>
</compile_context>

<pallas_src>
import functools

import jax
import jax.numpy as jnp
from jax.experimental import pallas as pl
from jax.experimental.pallas import tpu as pltpu

ARMINT = False  # float path, matches the `else` branches of the module
# TODO(synk): ARMINT=True integer path (int32 tensors, true `//`) is not
# implemented; this kernel covers the ARMINT=False float path only.


def _linres_kernel(x_ref, w_ref, b_ref, o_ref, *, scale: int, pow2: bool, precision):
    x = x_ref[...].astype(jnp.float32)           # [tm, Fp]  caller dtype -> f32
    w = w_ref[...]                               # [Fp, Fp]  pre-transposed block-diag
    b = b_ref[...]                               # [1, Fp]
    # F.linear(x, W, b) == x @ W.T + b ; W.T was materialized once in the wrapper.
    y = jnp.dot(x, w, preferred_element_type=jnp.float32, precision=precision) + b
    if scale == 0:
        o_ref[...] = (y + x).astype(o_ref.dtype)
    else:
        s = float(scale)
        half = float(scale // 2)
        t = y + x * s + half
        if pow2:
            q = jnp.floor(t * (1.0 / s))         # exact for power-of-two scales
        else:
            q = jnp.floor(t / s)
        # .to(th.int32).to(th.float)
        o_ref[...] = q.astype(jnp.int32).astype(o_ref.dtype)


def _pack_params(weight, bias, pack_lanes: int = 128):
    """Pre-transpose the weight and expand to a lane-dense block-diagonal matrix.

    For feat < pack_lanes, G = pack_lanes // feat rows of x are packed
    side-by-side into one pack_lanes-wide row and the weight becomes a
    (G*feat, G*feat) block-diagonal matrix so packed rows stay independent.
    pack_lanes=128 is right for all generations; 256 could help on v6e/v7x only
    if the (f32-emulated) MXU ever became the bottleneck (kernel is HBM-bound).
    """
    out_ft, in_ft = weight.shape
    assert out_ft == in_ft, "residual connection needs out_ft == in_ft"
    feat = in_ft
    G = (pack_lanes // feat) if (feat < pack_lanes and pack_lanes % feat == 0) else 1
    Fp = G * feat
    wt = jnp.asarray(weight, jnp.float32).T      # pre-transpose once (wrapper-side)
    bf = jnp.asarray(bias, jnp.float32)
    if G > 1:
        w_big = jnp.kron(jnp.eye(G, dtype=jnp.float32), wt)
        b_big = jnp.tile(bf, G).reshape(1, Fp)
    else:
        w_big = wt
        b_big = bf.reshape(1, Fp)
    return w_big, b_big, G, Fp, feat


def _x_block_spec(tm, Fp, num_steps):
    idx = lambda i: (i, 0)
    if num_steps >= 2:
        try:
            # Deeper input buffering hides per-step DMA start latency on short
            # grids; costs one extra tm*Fp tile of VMEM (tiny).
            return pl.BlockSpec((tm, Fp), idx, pipeline_mode=pl.Buffered(3)), 3
        except TypeError:
            pass
    return pl.BlockSpec((tm, Fp), idx), 2


def _linres_forward(x, w_big, b_big, G, Fp, feat, scale):
    B, in_ft = x.shape
    assert in_ft == feat

    # --- pad B only up to a multiple of G (<= G-1 rows): needed for the free
    #     row-major (B, feat) -> (rows, Fp) reshape.  No pad when B % G == 0.
    B_pad = -(-B // G) * G
    xp = x if B_pad == B else jnp.pad(x, ((0, B_pad - B), (0, 0)))
    rows = B_pad // G
    xr = xp.reshape(rows, Fp)                    # caller dtype preserved

    # --- row tile: large (cap 2048) but with >=2 grid steps when there is
    #     enough work so both v7x TensorCores get a share.  Ragged tails are
    #     handled by the cdiv grid (partial last block), not by padding.
    cap = 2048
    if rows <= 8:
        tm = rows                                # block == full dim (allowed)
    else:
        half = -(-rows // 2)
        tm = max(8, min(cap, -(-half // 8) * 8))
    num_steps = -(-rows // tm)

    x_spec, n_x_buf = _x_block_spec(tm, Fp, num_steps)

    # --- tight, derived VMEM budget (don't claim a whole v7x core's 64 MiB)
    itemsize = jnp.dtype(x.dtype).itemsize
    footprint = (n_x_buf * tm * Fp * itemsize    # pipelined x tiles
                 + 2 * tm * Fp * itemsize        # pipelined out tiles
                 + 2 * (Fp * Fp + Fp) * 4)       # weight + bias (double-buffered)
    vmem_limit = int(min(48 << 20, max(16 << 20, 2 * footprint)))

    kernel = functools.partial(
        _linres_kernel,
        scale=scale,
        pow2=(scale > 0 and (scale & (scale - 1)) == 0),
        # exact integer semantics for the quantized path; default elsewhere
        precision=(jax.lax.Precision.HIGHEST if scale != 0 else None),
    )
    out = pl.pallas_call(
        kernel,
        out_shape=jax.ShapeDtypeStruct((rows, Fp), x.dtype),
        grid=(num_steps,),
        in_specs=[
            x_spec,                                      # packed x row-tile
            pl.BlockSpec((Fp, Fp), lambda i: (0, 0)),    # full block-diag weight
            pl.BlockSpec((1, Fp), lambda i: (0, 0)),     # tiled bias
        ],
        out_specs=pl.BlockSpec((tm, Fp), lambda i: (i, 0)),
        compiler_params=pltpu.CompilerParams(
            dimension_semantics=("parallel",),           # shards across v7x's 2 TCs
            vmem_limit_bytes=vmem_limit,
        ),
    )(xr, w_big, b_big)

    # unpack / drop the (at most G-1) padded rows; already in the caller dtype
    return out.reshape(B_pad, feat)[:B]


def make_custom_linear_res_block(weight, bias, scale: int = 0, pack_lanes: int = 128):
    """Pack parameters once (hoisted weight prep); return a jitted forward fn."""
    w_big, b_big, G, Fp, feat = _pack_params(weight, bias, pack_lanes)

    @jax.jit
    def fwd(x):
        return _linres_forward(x, w_big, b_big, G, Fp, feat, scale)

    return fwd


def custom_linear_res_block(x, weight, bias, scale: int = 0):
    """One-shot convenience wrapper (re-packs the weight per call)."""
    w_big, b_big, G, Fp, feat = _pack_params(weight, bias)
    return _linres_forward(x, w_big, b_big, G, Fp, feat, scale)


def _reference(x, weight, bias, scale: int):
    prec = jax.lax.Precision.HIGHEST if scale != 0 else None
    y = jnp.dot(x, weight.T, precision=prec) + bias[None, :]
    if scale == 0:
        return y + x
    return jnp.floor(
        (y + x * scale + scale // 2) / scale).astype(jnp.int32).astype(jnp.float32)


if __name__ == "__main__":
    B, FEAT = 8, 32  # batch of 8 rows, in_ft = out_ft = 32

    key = jax.random.PRNGKey(0)
    kx, kw, kb, kqw, kqb, kx2 = jax.random.split(key, 6)

    x = jax.random.normal(kx, (B, FEAT), dtype=jnp.float32)
    weight = jax.random.normal(kw, (FEAT, FEAT), dtype=jnp.float32) * 0.1
    bias = jax.random.normal(kb, (FEAT,), dtype=jnp.float32) * 0.1

    # --- scale == 0 path (float residual linear)
    fwd0 = make_custom_linear_res_block(weight, bias, scale=0)
    out0 = jax.block_until_ready(fwd0(x))
    ref0 = _reference(x, weight, bias, 0)
    assert jnp.allclose(out0, ref0, atol=1e-4, rtol=1e-4), "scale==0 mismatch"

    # --- scale != 0 path (ARMINT=False: int-valued floats, exact floor check)
    scale = 256
    qw = jax.random.randint(kqw, (FEAT, FEAT), -8, 8).astype(jnp.float32)
    qb = jax.random.randint(kqb, (FEAT,), -64, 64).astype(jnp.float32)
    xq = jax.random.randint(kx, (B, FEAT), -512, 512).astype(jnp.float32)
    fwd1 = make_custom_linear_res_block(qw, qb, scale=scale)
    out1 = jax.block_until_ready(fwd1(xq))
    ref1 = _reference(xq, qw, qb, scale)
    assert jnp.array_equal(out1, ref1), "scale!=0 mismatch"

    # --- ragged batch (B % G != 0) -> minimal G-pad + single partial tile
    B2 = 10
    x2 = jax.random.normal(kx2, (B2, FEAT), dtype=jnp.float32)
    out2 = jax.block_until_ready(fwd0(x2))
    ref2 = _reference(x2, weight, bias, 0)
    assert jnp.allclose(out2, ref2, atol=1e-4, rtol=1e-4), "ragged-batch mismatch"

    # --- larger batch -> multi-step grid (>=2 steps for v7x) with a partial tail tile
    B3 = 200
    x3 = jax.random.normal(kx2, (B3, FEAT), dtype=jnp.float32)
    out3 = jax.block_until_ready(fwd0(x3))
    ref3 = _reference(x3, weight, bias, 0)
    assert jnp.allclose(out3, ref3, atol=1e-4, rtol=1e-4), "multi-tile mismatch"

    print("KERNEL_OK")
</pallas_src>

<mosaic_0001>
module attributes {stable_mosaic.version = 11 : i64} {
  func.func @_linres_kernel(%arg0: i32, %arg1: memref<2x128xf32, #tpu.memory_space<vmem>>, %arg2: memref<128x128xf32, #tpu.memory_space<vmem>>, %arg3: memref<1x128xf32, #tpu.memory_space<vmem>>, %arg4: memref<2x128xf32, #tpu.memory_space<vmem>>) attributes {dimension_semantics = [#tpu.dimension_semantics<parallel>], iteration_bounds = array<i64: 1>, scalar_prefetch = 0 : i64, scratch_operands = 0 : i64, tpu.core_type = #tpu.core_type<tc>, window_params = [{transform_indices = @transform_0, window_bounds = array<i64: 2, 128>}, {pipeline_mode = #tpu.pipeline_mode<synchronous>, transform_indices = @transform_1, window_bounds = array<i64: 128, 128>}, {pipeline_mode = #tpu.pipeline_mode<synchronous>, transform_indices = @transform_2, window_bounds = array<i64: 1, 128>}, {transform_indices = @transform_3, window_bounds = array<i64: 2, 128>}]} {
    %c0 = arith.constant 0 : index
    %c0_0 = arith.constant 0 : index
    %0 = vector.load %arg1[%c0, %c0_0] : memref<2x128xf32, #tpu.memory_space<vmem>>, vector<2x128xf32>
    %c0_1 = arith.constant 0 : index
    %c0_2 = arith.constant 0 : index
    %1 = vector.load %arg2[%c0_1, %c0_2] : memref<128x128xf32, #tpu.memory_space<vmem>>, vector<128x128xf32>
    %c0_3 = arith.constant 0 : index
    %c0_4 = arith.constant 0 : index
    %2 = vector.load %arg3[%c0_3, %c0_4] : memref<1x128xf32, #tpu.memory_space<vmem>>, vector<1x128xf32>
    %cst = arith.constant dense<0.000000e+00> : vector<2x128xf32>
    %3 = tpu.matmul %0, %1, %cst {dimension_numbers = #tpu.dot_dimension_numbers<[1], [0], [0], [1], [0, 0, 1, 1], [], []>} : vector<2x128xf32>, vector<128x128xf32>, vector<2x128xf32> -> vector<2x128xf32>
    %4 = vector.broadcast %2 : vector<1x128xf32> to vector<2x128xf32>
    %5 = arith.addf %3, %4 : vector<2x128xf32>
    %6 = arith.addf %5, %0 : vector<2x128xf32>
    %c0_5 = arith.constant 0 : index
    %c0_6 = arith.constant 0 : index
    %7 = vector.load %arg4[%c0_5, %c0_6] : memref<2x128xf32, #tpu.memory_space<vmem>>, vector<2x128xf32>
    tpu.vector_store %arg4[%c0_5, %c0_6], %6 {strides = array<i32>} : memref<2x128xf32, #tpu.memory_space<vmem>>, vector<2x128xf32>,
    return
  }
  func.func @transform_0(%arg0: i32) -> (i32, i32) {
    %c0_i32 = arith.constant 0 : i32
    %c0_i32_0 = arith.constant 0 : i32
    return %arg0, %c0_i32 : i32, i32
  }
  func.func @transform_1(%arg0: i32) -> (i32, i32) {
    %c0_i32 = arith.constant 0 : i32
    %c0_i32_0 = arith.constant 0 : i32
    %c0_i32_1 = arith.constant 0 : i32
    return %c0_i32, %c0_i32_0 : i32, i32
  }
  func.func @transform_2(%arg0: i32) -> (i32, i32) {
    %c0_i32 = arith.constant 0 : i32
    %c0_i32_0 = arith.constant 0 : i32
    %c0_i32_1 = arith.constant 0 : i32
    return %c0_i32, %c0_i32_0 : i32, i32
  }
  func.func @transform_3(%arg0: i32) -> (i32, i32) {
    %c0_i32 = arith.constant 0 : i32
    %c0_i32_0 = arith.constant 0 : i32
    return %arg0, %c0_i32 : i32, i32
  }
}

</mosaic_0001>

<bundles_post_ra>
// kernel: fwd.1
= control target key start
LH: loop header
LB: loop body
LE: loop exit
PB: predicated region body
PF: predicated region fallthrough
CT: control target
= control target key end

     0   :  { %8 = vsyncpa [#allocation3], 0  ;;  %s236_s12 = smov [#allocation2]   ;;  %s283_s0 = inlined_call_operand.vmem [shape: f32[2,128], index: 0, kind: input, shape index: {}]   ;;  %s284_s1 = inlined_call_operand.hbm [shape: f32[128,128], index: 1, kind: input, shape index: {}]   ;;  %s285_s2 = inlined_call_operand.vmem [shape: f32[1,128], index: 2, kind: input, shape index: {}]   ;;  %s286_s3 = inlined_call_operand.vmem [shape: f32[2,128], index: 3, kind: output, shape index: {}]  }
   0x1   :  { %s16_s13 = sshll.u32 %s236_s12, 4  ;;  %s212_s16 = scalar_lea.hbm %s284_s1, 2048  ;;  %s17_s13 = int_to_ptr.vmem [resolvable:$true] %s16_s13 }
   0x2   :  { %p213_p0 = scmp.ne.s32.totalorder %s284_s1, %s212_s16  ;;  %p216_p1 = scmp.lt.u32.totalorder %s212_s16, %s284_s1 }
   0x4   :  { %p218_p2 = pnand %p216_p1, %p213_p0 }
   0x6   :  { %221 = shalt.err (!%p218_p2)
}
   0x7   :  { %s222_s21 = scalar_lea.vmem %s17_s13, 2048  ;;  %p227_p4 = scmp.lt.s32.totalorder %s17_s13, %s17_s13 }
   0x8   :  { %p223_p3 = scmp.ne.s32.totalorder %s17_s13, %s222_s21  ;;  %p228_p5 = scmp.lt.s32.totalorder %s222_s21, %s222_s21 }
   0xa   :  { %p229_p6 = por %p228_p5, %p227_p4 }
   0xc   :  { %p230_p7 = pnand %p229_p6, %p223_p3 }
   0xe   :  { %233 = shalt.err (!%p230_p7)
}
   0xf   :  { %s237_s22 = smov 128   ;;  %s238_s23 = smov 8  }
  0x10   :  { %22 = dma.hbm_to_vmem [thread:$0]  %s284_s1, 2048, %s17_s13, [#allocation3], %s237_s22, %s237_s22, %s238_s23  }
  0x11   :  { %234 = dma.done.wait [#allocation3], 2048  }
  0x12   :  { %235 = vsyncadd [#allocation3], 4294965248  ;;  %v239_v0 = vmov 0.0|0.0   ;;  %vm240_vm0 = vmmov 0   ;;  %v241_v1 = vmov 0.0   ;;  %v29_v2 = vld [vmem:[#allocation2] sm:$0xff] }
  0x13   :  { %182 = vmatprep.subr.bf16.mxu0 %v239_v0  ;;  %179 = vmatprep.mubr.msk.f32.mxu0 %vm240_vm0, %v241_v1  ;;  %v30_v3 = vld [vmem:[#allocation2 + $0x8] sm:$0xff]  ;;  %v31_v4 = vld [vmem:[#allocation2 + $0x10] sm:$0xff]  ;;  %v32_v6 = vld [vmem:[#allocation2 + $0x18] sm:$0xff] }
  0x14   :  { %v183_v5 = vpack.c.bf16 %v30_v3, %v29_v2  ;;  %v186_v7 = vpack.c.bf16 %v32_v6, %v31_v4  ;;  %v33_v8 = vld [vmem:[#allocation2 + $0x20] sm:$0xff]  ;;  %v34_v9 = vld [vmem:[#allocation2 + $0x28] sm:$0xff]  ;;  %v35_v11 = vld [vmem:[#allocation2 + $0x30] sm:$0xff] }
  0x15   :  { %v189_v10 = vpack.c.bf16 %v34_v9, %v33_v8  ;;  %v36_v12 = vld [vmem:[#allocation2 + $0x38] sm:$0xff]  ;;  %v37_v14 = vld [vmem:[#allocation2 + $0x40] sm:$0xff]  ;;  %v38_v15 = vld [vmem:[#allocation2 + $0x48] sm:$0xff] }
  0x16   :  { %184 = vmatpush3.bf16.msra.mxu0 %v183_v5  ;;  %v192_v13 = vpack.c.bf16 %v36_v12, %v35_v11  ;;  %v195_v16 = vpack.c.bf16 %v38_v15, %v37_v14  ;;  %v39_v17 = vld [vmem:[#allocation2 + $0x50] sm:$0xff]  ;;  %v40_v18 = vld [vmem:[#allocation2 + $0x58] sm:$0xff]  ;;  %v41_v20 = vld [vmem:[#allocation2 + $0x60] sm:$0xff] }
  0x17   :  { %185 = vmatprep.subr.bf16.mxu0 %v239_v0  ;;  %v198_v19 = vpack.c.bf16 %v40_v18, %v39_v17  ;;  %v42_v21 = vld [vmem:[#allocation2 + $0x68] sm:$0xff]  ;;  %v43_v23 = vld [vmem:[#allocation2 + $0x70] sm:$0xff]  ;;  %v44_v24 = vld [vmem:[#allocation2 + $0x78] sm:$0xff] }
  0x18   :  { %v201_v22 = vpack.c.bf16 %v42_v21, %v41_v20  ;;  %v204_v25 = vpack.c.bf16 %v44_v24, %v43_v23  ;;  %v28_v26 = vld [vmem:[%s283_s0] sm:$0x3] }
  0x19   :  { %v129_v27 = vld [vmem:[%s285_s2] ss:$0 sm:$0xff] }
  0x1a   :  { %187 = vmatpush3.bf16.msra.mxu0 %v186_v7 }
  0x1b   :  { %188 = vmatprep.subr.bf16.mxu0 %v239_v0 }
  0x1e   :  { %190 = vmatpush3.bf16.msra.mxu0 %v189_v10 }
  0x1f   :  { %191 = vmatprep.subr.bf16.mxu0 %v239_v0 }
  0x22   :  { %193 = vmatpush3.bf16.msra.mxu0 %v192_v13 }
  0x23   :  { %194 = vmatprep.subr.bf16.mxu0 %v239_v0 }
  0x26   :  { %196 = vmatpush3.bf16.msra.mxu0 %v195_v16 }
  0x27   :  { %197 = vmatprep.subr.bf16.mxu0 %v239_v0 }
  0x2a   :  { %199 = vmatpush3.bf16.msra.mxu0 %v198_v19 }
  0x2b   :  { %200 = vmatprep.subr.bf16.mxu0 %v239_v0 }
  0x2e   :  { %202 = vmatpush3.bf16.msra.mxu0 %v201_v22 }
  0x2f   :  { %203 = vmatprep.subr.bf16.mxu0 %v239_v0 }
  0x32   :  { %205 = vmatpush3.bf16.msra.mxu0 %v204_v25 }
  0x35   :  { %180 = vmatmul.mubr.f32.vlgmr.msra.gmra.mrb[0].mxu0 %v28_v26 }
 0x108   :  { %v118_v28 = vpop.f32.mrb[0].mxu0 }
 0x109   :  { %v119_v29 = vadd.f32 %v129_v27, %v118_v28  ;;  %v181_v30 = vpop.f32.mrb[1].mxu0 }
 0x10b   :  { %v122_v31 = vadd.f32 %v119_v29, %v28_v26 }
 0x10d   :  { %123 = vst [vmem:[%s286_s3] sm:$0x3] %v122_v31 }
 0x10e   :  { %128 = vsyncpa [#allocation3], 1 }

</bundles_post_ra>
